<compile_context>
chip_gen: v5e
topology: v5e:2x2
jax: 0.10.0
libtpu: 0.0.40
codegen_flags: <defaults>
</compile_context>

<pallas_src>
import math

import jax
import jax.numpy as jnp
from jax import lax
from jax.experimental import pallas as pl
from jax.experimental.pallas import tpu as pltpu


def _cross_attention_kernel(hist_ids_ref, item_ids_ref, user_ids_ref,   # SMEM (scalar prefetch)
                            item_table_hbm, user_table_hbm,             # HBM (pl.ANY)
                            wqkv_t_ref, bqkv_ref, wo_t_ref, bo_ref,     # VMEM resident
                            wfc_ref, bfc_ref,                           # VMEM resident / SMEM scalar
                            score_ref, attnw_ref,                       # VMEM outputs
                            item_tab, user_tab, qkv_in_buf, user_buf,   # VMEM scratch
                            sem):                                       # DMA semaphores (2,)
    f32 = jnp.float32
    H, B = attnw_ref.shape
    D = wo_t_ref.shape[0]
    cd = wqkv_t_ref.dtype          # MXU compute dtype (bf16 on all generations)

    # ---- bulk embedding-table DMAs: 2 descriptors, 2 semaphores --------------
    item_cp = pltpu.make_async_copy(item_table_hbm, item_tab, sem.at[0])
    user_cp = pltpu.make_async_copy(user_table_hbm, user_tab, sem.at[1])
    item_cp.start()
    user_cp.start()

    # Only the item table gates Q/K/V; the user-table DMA stays in flight and is
    # hidden under the projection matmuls / attention / softmax below.
    item_cp.wait()

    # ---- in-VMEM row gather (no per-row DMA descriptors) ---------------------
    for r in range(H):
        qkv_in_buf[pl.ds(r, 1), :] = item_tab[pl.ds(hist_ids_ref[r], 1), :]
    for r in range(B):
        qkv_in_buf[pl.ds(H + r, 1), :] = item_tab[pl.ds(item_ids_ref[r], 1), :]

    # ---- fused QKV projection: one MXU call on packed [Wq|Wk|Wv] -------------
    lhs = qkv_in_buf[...].astype(cd)                                     # (H+B, D)
    proj = jnp.dot(lhs, wqkv_t_ref[...],
                   preferred_element_type=f32) + bqkv_ref[...]           # (H+B, 3D)
    q = proj[:H, 0:D]                                                    # (H, D)
    k = proj[H:, D:2 * D]                                                # (B, D)
    v = proj[H:, 2 * D:3 * D]                                            # (B, D)

    # ---- attention: softmax over the key axis (B), no explicit transposes ----
    s = lax.dot_general(q, k, (((1,), (1,)), ((), ())),
                        preferred_element_type=f32)                      # (H, B)
    m = jnp.max(s, axis=-1, keepdims=True)
    p = jnp.exp(s - m)
    denom = jnp.sum(p, axis=-1, keepdims=True)
    attn = p * pl.reciprocal(denom, approx=True)                         # (H, B)

    ao = jnp.dot(attn, v, preferred_element_type=f32)                    # (H, D)
    out = jnp.dot(ao.astype(cd), wo_t_ref[...],
                  preferred_element_type=f32) + bo_ref[...]              # (H, D)

    # torch.sum(attention_output, dim=0) -> (1, D), broadcast-add to user embed
    weighted_history = jnp.sum(out, axis=0, keepdims=True)               # (1, D)

    # user rows only needed now — wait was deferred to hide the DMA.
    user_cp.wait()
    for r in range(B):
        user_buf[pl.ds(r, 1), :] = user_tab[pl.ds(user_ids_ref[r], 1), :]
    user_history = user_buf[...] + weighted_history                      # (B, D)

    # final fc, emitted lane-dense as (1, B): contract D of wfc with D of rows
    score = lax.dot_general(wfc_ref[...], user_history,
                            (((1,), (1,)), ((), ())),
                            preferred_element_type=f32) + bfc_ref[0]     # (1, B)

    score_ref[...] = score
    attnw_ref[...] = attn


def prepare_params(params, compute_dtype=jnp.bfloat16):
    """Wrapper-side layout plumbing: pack [Wq|Wk|Wv], fold 1/sqrt(D), transpose."""
    D = params["wq"].shape[0]
    scale = 1.0 / math.sqrt(D)
    f32 = jnp.float32
    wqkv_t = jnp.concatenate(
        [params["wq"].T * scale, params["wk"].T, params["wv"].T], axis=1)   # (D, 3D)
    bqkv = jnp.concatenate(
        [params["bq"] * scale, params["bk"], params["bv"]]).reshape(1, 3 * D)
    return {
        # Embedding tables stay f32 in HBM; whole tables are DMA'd into VMEM.
        "item_table": params["item_embedding"].astype(f32),
        "user_table": params["user_embedding"].astype(f32),
        "wqkv_t": wqkv_t.astype(compute_dtype),
        "bqkv": bqkv.astype(f32),
        "wo_t": params["wo"].T.astype(compute_dtype),                       # (D, D)
        "bo": params["bo"].reshape(1, D).astype(f32),
        "wfc": params["wfc"].reshape(1, D).astype(f32),
        "bfc": params["bfc"].reshape(1).astype(f32),
    }


def cross_attention_forward(kparams, user_ids, item_ids, historical_item_ids):
    item_table = kparams["item_table"]
    user_table = kparams["user_table"]
    num_items, D = item_table.shape
    num_users = user_table.shape[0]
    hist_ids = historical_item_ids.reshape(-1).astype(jnp.int32)   # (H,)
    item_ids = item_ids.astype(jnp.int32)                          # (B,)
    user_ids = user_ids.astype(jnp.int32)                          # (B,)
    H = hist_ids.shape[0]
    B = item_ids.shape[0]

    def resident(arr):  # whole-array VMEM block, constant index map (kept resident)
        # TODO(synk): add pipeline_mode=pl.Buffered(1) at production D so large
        # resident weights are not double-buffered on v7x's 64 MiB VMEM.
        shape = arr.shape
        return pl.BlockSpec(shape, lambda *_: (0,) * len(shape))

    # Size the scoped-VMEM limit from the actual footprint (v7x: 64 MiB phys).
    def nbytes(a):
        return int(a.size) * a.dtype.itemsize
    resident_bytes = sum(nbytes(kparams[k])
                         for k in ("wqkv_t", "bqkv", "wo_t", "bo", "wfc"))
    scratch_bytes = 4 * (int(item_table.size) + int(user_table.size)
                         + (H + B) * D + B * D)
    out_bytes = 4 * (B + H * B)
    vmem_limit = int(2 * (resident_bytes + out_bytes) + scratch_bytes + (4 << 20))

    grid_spec = pltpu.PrefetchScalarGridSpec(
        num_scalar_prefetch=3,            # hist_ids, item_ids, user_ids -> SMEM
        grid=(1,),
        in_specs=[
            pl.BlockSpec(memory_space=pl.ANY),    # item embedding table (HBM)
            pl.BlockSpec(memory_space=pl.ANY),    # user embedding table (HBM)
            resident(kparams["wqkv_t"]), resident(kparams["bqkv"]),
            resident(kparams["wo_t"]), resident(kparams["bo"]),
            resident(kparams["wfc"]),
            pl.BlockSpec(memory_space=pltpu.MemorySpace.SMEM),    # bfc scalar
        ],
        out_specs=(
            pl.BlockSpec((1, B), lambda *_: (0, 0)),   # lane-dense score row
            pl.BlockSpec((H, B), lambda *_: (0, 0)),   # attention weights
        ),
        scratch_shapes=[
            pltpu.VMEM((num_items, D), jnp.float32),   # item table in VMEM
            pltpu.VMEM((num_users, D), jnp.float32),   # user table in VMEM
            pltpu.VMEM((H + B, D), jnp.float32),       # gathered [hist; item] rows
            pltpu.VMEM((B, D), jnp.float32),           # gathered user rows
            pltpu.SemaphoreType.DMA((2,)),             # one sem per bulk table DMA
        ],
    )

    score_row, attn = pl.pallas_call(
        _cross_attention_kernel,
        out_shape=(jax.ShapeDtypeStruct((1, B), jnp.float32),
                   jax.ShapeDtypeStruct((H, B), jnp.float32)),
        grid_spec=grid_spec,
        compiler_params=pltpu.CompilerParams(
            dimension_semantics=("arbitrary",),
            vmem_limit_bytes=vmem_limit),
    )(hist_ids, item_ids, user_ids,
      item_table, user_table,
      kparams["wqkv_t"], kparams["bqkv"], kparams["wo_t"], kparams["bo"],
      kparams["wfc"], kparams["bfc"])

    score = score_row.reshape(B, 1)              # PyTorch fc output shape (B, 1)
    attention_weights = attn.reshape(1, H, B)    # heads-averaged weights (1, H, B)
    return score, attention_weights


def reference_forward(kparams, user_ids, item_ids, historical_item_ids,
                      compute_dtype=jnp.bfloat16):
    """Pure-JAX reference with the same prepared (bf16) weights, exact softmax."""
    f32 = jnp.float32
    D = kparams["item_table"].shape[1]
    hist_ids = historical_item_ids.reshape(-1)
    hist = kparams["item_table"][hist_ids].astype(compute_dtype).astype(f32)
    item = kparams["item_table"][item_ids].astype(compute_dtype).astype(f32)
    user = kparams["user_table"][user_ids]
    wqkv = kparams["wqkv_t"].astype(f32)
    bqkv = kparams["bqkv"]
    q = hist @ wqkv[:, :D] + bqkv[:, :D]
    k = item @ wqkv[:, D:2 * D] + bqkv[:, D:2 * D]
    v = item @ wqkv[:, 2 * D:] + bqkv[:, 2 * D:]
    attn = jax.nn.softmax(q @ k.T, axis=-1)
    ao = attn @ v
    out = ao.astype(compute_dtype).astype(f32) @ kparams["wo_t"].astype(f32) \
        + kparams["bo"]
    user_history = user + jnp.sum(out, axis=0, keepdims=True)
    score = user_history @ kparams["wfc"].T + kparams["bfc"]
    return score, attn.reshape(1, *attn.shape)


def init_params(key, num_users, num_items, embedding_dim):
    D = embedding_dim
    keys = jax.random.split(key, 10)

    def unif(k, shape, bound):
        return jax.random.uniform(k, shape, jnp.float32, -bound, bound)

    bound_proj = math.sqrt(6.0 / (D + D))   # xavier-uniform-ish for in_proj
    bound_fc = 1.0 / math.sqrt(D)
    return {
        "user_embedding": jax.random.normal(keys[0], (num_users, D), jnp.float32),
        "item_embedding": jax.random.normal(keys[1], (num_items, D), jnp.float32),
        # MultiheadAttention in_proj split into q/k/v, each (D, D) + bias (D,)
        "wq": unif(keys[2], (D, D), bound_proj),
        "wk": unif(keys[3], (D, D), bound_proj),
        "wv": unif(keys[4], (D, D), bound_proj),
        "bq": jnp.zeros((D,), jnp.float32),
        "bk": jnp.zeros((D,), jnp.float32),
        "bv": jnp.zeros((D,), jnp.float32),
        # out_proj Linear(D, D)
        "wo": unif(keys[5], (D, D), bound_fc),
        "bo": unif(keys[6], (D,), bound_fc),
        # fc Linear(D, 1)
        "wfc": unif(keys[7], (1, D), bound_fc),
        "bfc": unif(keys[8], (1,), bound_fc),
    }


if __name__ == "__main__":
    num_users, num_items, embedding_dim = 16, 32, 32
    B, H = 2, 8   # batch of user/item ids, history length (history batch dim = 1)

    key = jax.random.PRNGKey(0)
    k_params, k_u, k_i, k_h = jax.random.split(key, 4)

    params = init_params(k_params, num_users, num_items, embedding_dim)
    kparams = prepare_params(params, compute_dtype=jnp.bfloat16)

    user_ids = jax.random.randint(k_u, (B,), 0, num_users)
    item_ids = jax.random.randint(k_i, (B,), 0, num_items)
    historical_item_ids = jax.random.randint(k_h, (H, 1), 0, num_items)

    score, attn_weights = cross_attention_forward(
        kparams, user_ids, item_ids, historical_item_ids)
    jax.block_until_ready((score, attn_weights))

    assert score.shape == (B, 1)
    assert attn_weights.shape == (1, H, B)
    assert bool(jnp.all(jnp.isfinite(score)))
    row_sums = jnp.sum(attn_weights, axis=-1)          # softmax rows must sum to 1
    assert bool(jnp.all(jnp.abs(row_sums - 1.0) < 3e-3))

    ref_score, ref_attn = reference_forward(
        kparams, user_ids, item_ids, historical_item_ids)
    assert bool(jnp.allclose(score, ref_score, atol=3e-2, rtol=3e-2))
    assert bool(jnp.allclose(attn_weights[0], ref_attn[0], atol=1e-2, rtol=1e-2))
    print("KERNEL_OK")
</pallas_src>

<mosaic_0001>
module attributes {stable_mosaic.version = 11 : i64} {
  func.func @_cross_attention_kernel(%arg0: i32, %arg1: memref<8xi32, #tpu.memory_space<smem>>, %arg2: memref<2xi32, #tpu.memory_space<smem>>, %arg3: memref<2xi32, #tpu.memory_space<smem>>, %arg4: memref<32x32xf32, #tpu.memory_space<any>>, %arg5: memref<16x32xf32, #tpu.memory_space<any>>, %arg6: memref<32x96xbf16, #tpu.memory_space<vmem>>, %arg7: memref<1x96xf32, #tpu.memory_space<vmem>>, %arg8: memref<32x32xbf16, #tpu.memory_space<vmem>>, %arg9: memref<1x32xf32, #tpu.memory_space<vmem>>, %arg10: memref<1x32xf32, #tpu.memory_space<vmem>>, %arg11: memref<1xf32, #tpu.memory_space<smem>>, %arg12: memref<1x2xf32, #tpu.memory_space<vmem>>, %arg13: memref<8x2xf32, #tpu.memory_space<vmem>>, %arg14: memref<32x32xf32, #tpu.memory_space<vmem>>, %arg15: memref<16x32xf32, #tpu.memory_space<vmem>>, %arg16: memref<10x32xf32, #tpu.memory_space<vmem>>, %arg17: memref<2x32xf32, #tpu.memory_space<vmem>>, %arg18: memref<2x!tpu.dma_semaphore, #tpu.memory_space<semaphore_mem>>) attributes {dimension_semantics = [#tpu.dimension_semantics<arbitrary>], iteration_bounds = array<i64: 1>, scalar_prefetch = 3 : i64, scratch_operands = 5 : i64, tpu.core_type = #tpu.core_type<tc>, window_params = [{}, {}, {pipeline_mode = #tpu.pipeline_mode<synchronous>, transform_indices = @transform_2, window_bounds = array<i64: 32, 96>}, {pipeline_mode = #tpu.pipeline_mode<synchronous>, transform_indices = @transform_3, window_bounds = array<i64: 1, 96>}, {pipeline_mode = #tpu.pipeline_mode<synchronous>, transform_indices = @transform_4, window_bounds = array<i64: 32, 32>}, {pipeline_mode = #tpu.pipeline_mode<synchronous>, transform_indices = @transform_5, window_bounds = array<i64: 1, 32>}, {pipeline_mode = #tpu.pipeline_mode<synchronous>, transform_indices = @transform_6, window_bounds = array<i64: 1, 32>}, {transform_indices = @transform_7, window_bounds = array<i64: 1>}, {pipeline_mode = #tpu.pipeline_mode<synchronous>, transform_indices = @transform_8, window_bounds = array<i64: 1, 2>}, {pipeline_mode = #tpu.pipeline_mode<synchronous>, transform_indices = @transform_9, window_bounds = array<i64: 8, 2>}]} {
    %c0_i32 = arith.constant 0 : i32
    %0 = tpu.memref_slice %arg18[%c0_i32] : memref<2x!tpu.dma_semaphore, #tpu.memory_space<semaphore_mem>> -> memref<1x!tpu.dma_semaphore, #tpu.memory_space<semaphore_mem>>
    %1 = tpu.memref_squeeze %0 : memref<1x!tpu.dma_semaphore, #tpu.memory_space<semaphore_mem>> -> memref<!tpu.dma_semaphore, #tpu.memory_space<semaphore_mem>>
    tpu.enqueue_dma source(%arg4 : memref<32x32xf32, #tpu.memory_space<any>>) target(%arg14 : memref<32x32xf32, #tpu.memory_space<vmem>>) target_semaphore(%1 : memref<!tpu.dma_semaphore, #tpu.memory_space<semaphore_mem>>)
    %c1_i32 = arith.constant 1 : i32
    %2 = tpu.memref_slice %arg18[%c1_i32] : memref<2x!tpu.dma_semaphore, #tpu.memory_space<semaphore_mem>> -> memref<1x!tpu.dma_semaphore, #tpu.memory_space<semaphore_mem>>
    %3 = tpu.memref_squeeze %2 : memref<1x!tpu.dma_semaphore, #tpu.memory_space<semaphore_mem>> -> memref<!tpu.dma_semaphore, #tpu.memory_space<semaphore_mem>>
    tpu.enqueue_dma source(%arg5 : memref<16x32xf32, #tpu.memory_space<any>>) target(%arg15 : memref<16x32xf32, #tpu.memory_space<vmem>>) target_semaphore(%3 : memref<!tpu.dma_semaphore, #tpu.memory_space<semaphore_mem>>)
    %c0_i32_0 = arith.constant 0 : i32
    %4 = tpu.memref_slice %arg18[%c0_i32_0] : memref<2x!tpu.dma_semaphore, #tpu.memory_space<semaphore_mem>> -> memref<1x!tpu.dma_semaphore, #tpu.memory_space<semaphore_mem>>
    %5 = tpu.memref_squeeze %4 : memref<1x!tpu.dma_semaphore, #tpu.memory_space<semaphore_mem>> -> memref<!tpu.dma_semaphore, #tpu.memory_space<semaphore_mem>>
    tpu.wait_dma2 semaphore(%5 : memref<!tpu.dma_semaphore, #tpu.memory_space<semaphore_mem>>) src(%arg4 : memref<32x32xf32, #tpu.memory_space<any>>) dst(%arg14 : memref<32x32xf32, #tpu.memory_space<vmem>>)
    %c0 = arith.constant 0 : index
    %6 = memref.load %arg1[%c0] : memref<8xi32, #tpu.memory_space<smem>>
    %7 = arith.index_cast %6 : i32 to index
    %c0_1 = arith.constant 0 : index
    %8 = vector.load %arg14[%7, %c0_1] : memref<32x32xf32, #tpu.memory_space<vmem>>, vector<1x32xf32>
    %c0_2 = arith.constant 0 : index
    %c0_3 = arith.constant 0 : index
    %9 = vector.load %arg16[%c0_2, %c0_3] : memref<10x32xf32, #tpu.memory_space<vmem>>, vector<1x32xf32>
    tpu.vector_store %arg16[%c0_2, %c0_3], %8 {strides = array<i32>} : memref<10x32xf32, #tpu.memory_space<vmem>>, vector<1x32xf32>,
    %c1 = arith.constant 1 : index
    %10 = memref.load %arg1[%c1] : memref<8xi32, #tpu.memory_space<smem>>
    %11 = arith.index_cast %10 : i32 to index
    %c0_4 = arith.constant 0 : index
    %12 = vector.load %arg14[%11, %c0_4] : memref<32x32xf32, #tpu.memory_space<vmem>>, vector<1x32xf32>
    %c1_5 = arith.constant 1 : index
    %c0_6 = arith.constant 0 : index
    %13 = vector.load %arg16[%c1_5, %c0_6] : memref<10x32xf32, #tpu.memory_space<vmem>>, vector<1x32xf32>
    tpu.vector_store %arg16[%c1_5, %c0_6], %12 {strides = array<i32>} : memref<10x32xf32, #tpu.memory_space<vmem>>, vector<1x32xf32>,
    %c2 = arith.constant 2 : index
    %14 = memref.load %arg1[%c2] : memref<8xi32, #tpu.memory_space<smem>>
    %15 = arith.index_cast %14 : i32 to index
    %c0_7 = arith.constant 0 : index
    %16 = vector.load %arg14[%15, %c0_7] : memref<32x32xf32, #tpu.memory_space<vmem>>, vector<1x32xf32>
    %c2_8 = arith.constant 2 : index
    %c0_9 = arith.constant 0 : index
    %17 = vector.load %arg16[%c2_8, %c0_9] : memref<10x32xf32, #tpu.memory_space<vmem>>, vector<1x32xf32>
    tpu.vector_store %arg16[%c2_8, %c0_9], %16 {strides = array<i32>} : memref<10x32xf32, #tpu.memory_space<vmem>>, vector<1x32xf32>,
    %c3 = arith.constant 3 : index
    %18 = memref.load %arg1[%c3] : memref<8xi32, #tpu.memory_space<smem>>
    %19 = arith.index_cast %18 : i32 to index
    %c0_10 = arith.constant 0 : index
    %20 = vector.load %arg14[%19, %c0_10] : memref<32x32xf32, #tpu.memory_space<vmem>>, vector<1x32xf32>
    %c3_11 = arith.constant 3 : index
    %c0_12 = arith.constant 0 : index
    %21 = vector.load %arg16[%c3_11, %c0_12] : memref<10x32xf32, #tpu.memory_space<vmem>>, vector<1x32xf32>
    tpu.vector_store %arg16[%c3_11, %c0_12], %20 {strides = array<i32>} : memref<10x32xf32, #tpu.memory_space<vmem>>, vector<1x32xf32>,
    %c4 = arith.constant 4 : index
    %22 = memref.load %arg1[%c4] : memref<8xi32, #tpu.memory_space<smem>>
    %23 = arith.index_cast %22 : i32 to index
    %c0_13 = arith.constant 0 : index
    %24 = vector.load %arg14[%23, %c0_13] : memref<32x32xf32, #tpu.memory_space<vmem>>, vector<1x32xf32>
    %c4_14 = arith.constant 4 : index
    %c0_15 = arith.constant 0 : index
    %25 = vector.load %arg16[%c4_14, %c0_15] : memref<10x32xf32, #tpu.memory_space<vmem>>, vector<1x32xf32>
    tpu.vector_store %arg16[%c4_14, %c0_15], %24 {strides = array<i32>} : memref<10x32xf32, #tpu.memory_space<vmem>>, vector<1x32xf32>,
    %c5 = arith.constant 5 : index
    %26 = memref.load %arg1[%c5] : memref<8xi32, #tpu.memory_space<smem>>
    %27 = arith.index_cast %26 : i32 to index
    %c0_16 = arith.constant 0 : index
    %28 = vector.load %arg14[%27, %c0_16] : memref<32x32xf32, #tpu.memory_space<vmem>>, vector<1x32xf32>
    %c5_17 = arith.constant 5 : index
    %c0_18 = arith.constant 0 : index
    %29 = vector.load %arg16[%c5_17, %c0_18] : memref<10x32xf32, #tpu.memory_space<vmem>>, vector<1x32xf32>
    tpu.vector_store %arg16[%c5_17, %c0_18], %28 {strides = array<i32>} : memref<10x32xf32, #tpu.memory_space<vmem>>, vector<1x32xf32>,
    %c6 = arith.constant 6 : index
    %30 = memref.load %arg1[%c6] : memref<8xi32, #tpu.memory_space<smem>>
    %31 = arith.index_cast %30 : i32 to index
    %c0_19 = arith.constant 0 : index
    %32 = vector.load %arg14[%31, %c0_19] : memref<32x32xf32, #tpu.memory_space<vmem>>, vector<1x32xf32>
    %c6_20 = arith.constant 6 : index
    %c0_21 = arith.constant 0 : index
    %33 = vector.load %arg16[%c6_20, %c0_21] : memref<10x32xf32, #tpu.memory_space<vmem>>, vector<1x32xf32>
    tpu.vector_store %arg16[%c6_20, %c0_21], %32 {strides = array<i32>} : memref<10x32xf32, #tpu.memory_space<vmem>>, vector<1x32xf32>,
    %c7 = arith.constant 7 : index
    %34 = memref.load %arg1[%c7] : memref<8xi32, #tpu.memory_space<smem>>
    %35 = arith.index_cast %34 : i32 to index
    %c0_22 = arith.constant 0 : index
    %36 = vector.load %arg14[%35, %c0_22] : memref<32x32xf32, #tpu.memory_space<vmem>>, vector<1x32xf32>
    %c7_23 = arith.constant 7 : index
    %c0_24 = arith.constant 0 : index
    %37 = vector.load %arg16[%c7_23, %c0_24] : memref<10x32xf32, #tpu.memory_space<vmem>>, vector<1x32xf32>
    tpu.vector_store %arg16[%c7_23, %c0_24], %36 {strides = array<i32>} : memref<10x32xf32, #tpu.memory_space<vmem>>, vector<1x32xf32>,
    %c0_25 = arith.constant 0 : index
    %38 = memref.load %arg2[%c0_25] : memref<2xi32, #tpu.memory_space<smem>>
    %39 = arith.index_cast %38 : i32 to index
    %c0_26 = arith.constant 0 : index
    %40 = vector.load %arg14[%39, %c0_26] : memref<32x32xf32, #tpu.memory_space<vmem>>, vector<1x32xf32>
    %c8 = arith.constant 8 : index
    %c0_27 = arith.constant 0 : index
    %41 = vector.load %arg16[%c8, %c0_27] : memref<10x32xf32, #tpu.memory_space<vmem>>, vector<1x32xf32>
    tpu.vector_store %arg16[%c8, %c0_27], %40 {strides = array<i32>} : memref<10x32xf32, #tpu.memory_space<vmem>>, vector<1x32xf32>,
    %c1_28 = arith.constant 1 : index
    %42 = memref.load %arg2[%c1_28] : memref<2xi32, #tpu.memory_space<smem>>
    %43 = arith.index_cast %42 : i32 to index
    %c0_29 = arith.constant 0 : index
    %44 = vector.load %arg14[%43, %c0_29] : memref<32x32xf32, #tpu.memory_space<vmem>>, vector<1x32xf32>
    %c9 = arith.constant 9 : index
    %c0_30 = arith.constant 0 : index
    %45 = vector.load %arg16[%c9, %c0_30] : memref<10x32xf32, #tpu.memory_space<vmem>>, vector<1x32xf32>
    tpu.vector_store %arg16[%c9, %c0_30], %44 {strides = array<i32>} : memref<10x32xf32, #tpu.memory_space<vmem>>, vector<1x32xf32>,
    %c0_31 = arith.constant 0 : index
    %c0_32 = arith.constant 0 : index
    %46 = vector.load %arg16[%c0_31, %c0_32] : memref<10x32xf32, #tpu.memory_space<vmem>>, vector<10x32xf32>
    %47 = arith.truncf %46 : vector<10x32xf32> to vector<10x32xbf16>
    %c0_33 = arith.constant 0 : index
    %c0_34 = arith.constant 0 : index
    %48 = vector.load %arg6[%c0_33, %c0_34] : memref<32x96xbf16, #tpu.memory_space<vmem>>, vector<32x96xbf16>
    %cst = arith.constant dense<0.000000e+00> : vector<10x96xf32>
    %49 = tpu.matmul %47, %48, %cst {dimension_numbers = #tpu.dot_dimension_numbers<[1], [0], [0], [1], [0, 0, 1, 1], [], []>} : vector<10x32xbf16>, vector<32x96xbf16>, vector<10x96xf32> -> vector<10x96xf32>
    %c0_35 = arith.constant 0 : index
    %c0_36 = arith.constant 0 : index
    %50 = vector.load %arg7[%c0_35, %c0_36] : memref<1x96xf32, #tpu.memory_space<vmem>>, vector<1x96xf32>
    %51 = vector.broadcast %50 : vector<1x96xf32> to vector<10x96xf32>
    %52 = arith.addf %49, %51 : vector<10x96xf32>
    %53 = vector.extract_strided_slice %52 {offsets = [0, 0], sizes = [8, 32], strides = [1, 1]} : vector<10x96xf32> to vector<8x32xf32>
    %54 = vector.extract_strided_slice %52 {offsets = [8, 32], sizes = [2, 32], strides = [1, 1]} : vector<10x96xf32> to vector<2x32xf32>
    %55 = vector.extract_strided_slice %52 {offsets = [8, 64], sizes = [2, 32], strides = [1, 1]} : vector<10x96xf32> to vector<2x32xf32>
    %cst_37 = arith.constant dense<0.000000e+00> : vector<8x2xf32>
    %56 = tpu.matmul %53, %54, %cst_37 {dimension_numbers = #tpu.dot_dimension_numbers<[1], [1], [0], [0], [0, 0, 1, 0], [], []>} : vector<8x32xf32>, vector<2x32xf32>, vector<8x2xf32> -> vector<8x2xf32>
    %cst_38 = arith.constant dense<0xFF800000> : vector<8xf32>
    %57 = vector.multi_reduction <maximumf>, %56, %cst_38 [1] : vector<8x2xf32> to vector<8xf32>
    %58 = vector.shape_cast %57 : vector<8xf32> to vector<8x1xf32>
    %59 = vector.broadcast %58 : vector<8x1xf32> to vector<8x2xf32>
    %60 = arith.subf %56, %59 : vector<8x2xf32>
    %61 = math.exp %60 : vector<8x2xf32>
    %cst_39 = arith.constant dense<0.000000e+00> : vector<8xf32>
    %62 = vector.multi_reduction <add>, %61, %cst_39 [1] : vector<8x2xf32> to vector<8xf32>
    %63 = vector.shape_cast %62 : vector<8xf32> to vector<8x1xf32>
    %64 = tpu.reciprocal %63 {approx = true} : vector<8x1xf32> -> vector<8x1xf32>
    %65 = vector.broadcast %64 : vector<8x1xf32> to vector<8x2xf32>
    %66 = arith.mulf %61, %65 : vector<8x2xf32>
    %cst_40 = arith.constant dense<0.000000e+00> : vector<8x32xf32>
    %67 = tpu.matmul %66, %55, %cst_40 {dimension_numbers = #tpu.dot_dimension_numbers<[1], [0], [0], [1], [0, 0, 1, 1], [], []>} : vector<8x2xf32>, vector<2x32xf32>, vector<8x32xf32> -> vector<8x32xf32>
    %68 = arith.truncf %67 : vector<8x32xf32> to vector<8x32xbf16>
    %c0_41 = arith.constant 0 : index
    %c0_42 = arith.constant 0 : index
    %69 = vector.load %arg8[%c0_41, %c0_42] : memref<32x32xbf16, #tpu.memory_space<vmem>>, vector<32x32xbf16>
    %cst_43 = arith.constant dense<0.000000e+00> : vector<8x32xf32>
    %70 = tpu.matmul %68, %69, %cst_43 {dimension_numbers = #tpu.dot_dimension_numbers<[1], [0], [0], [1], [0, 0, 1, 1], [], []>} : vector<8x32xbf16>, vector<32x32xbf16>, vector<8x32xf32> -> vector<8x32xf32>
    %c0_44 = arith.constant 0 : index
    %c0_45 = arith.constant 0 : index
    %71 = vector.load %arg9[%c0_44, %c0_45] : memref<1x32xf32, #tpu.memory_space<vmem>>, vector<1x32xf32>
    %72 = vector.broadcast %71 : vector<1x32xf32> to vector<8x32xf32>
    %73 = arith.addf %70, %72 : vector<8x32xf32>
    %cst_46 = arith.constant dense<0.000000e+00> : vector<32xf32>
    %74 = vector.multi_reduction <add>, %73, %cst_46 [0] : vector<8x32xf32> to vector<32xf32>
    %75 = vector.shape_cast %74 : vector<32xf32> to vector<1x32xf32>
    %c1_i32_47 = arith.constant 1 : i32
    %76 = tpu.memref_slice %arg18[%c1_i32_47] : memref<2x!tpu.dma_semaphore, #tpu.memory_space<semaphore_mem>> -> memref<1x!tpu.dma_semaphore, #tpu.memory_space<semaphore_mem>>
    %77 = tpu.memref_squeeze %76 : memref<1x!tpu.dma_semaphore, #tpu.memory_space<semaphore_mem>> -> memref<!tpu.dma_semaphore, #tpu.memory_space<semaphore_mem>>
    tpu.wait_dma2 semaphore(%77 : memref<!tpu.dma_semaphore, #tpu.memory_space<semaphore_mem>>) src(%arg5 : memref<16x32xf32, #tpu.memory_space<any>>) dst(%arg15 : memref<16x32xf32, #tpu.memory_space<vmem>>)
    %c0_48 = arith.constant 0 : index
    %78 = memref.load %arg3[%c0_48] : memref<2xi32, #tpu.memory_space<smem>>
    %79 = arith.index_cast %78 : i32 to index
    %c0_49 = arith.constant 0 : index
    %80 = vector.load %arg15[%79, %c0_49] : memref<16x32xf32, #tpu.memory_space<vmem>>, vector<1x32xf32>
    %c0_50 = arith.constant 0 : index
    %c0_51 = arith.constant 0 : index
    %81 = vector.load %arg17[%c0_50, %c0_51] : memref<2x32xf32, #tpu.memory_space<vmem>>, vector<1x32xf32>
    tpu.vector_store %arg17[%c0_50, %c0_51], %80 {strides = array<i32>} : memref<2x32xf32, #tpu.memory_space<vmem>>, vector<1x32xf32>,
    %c1_52 = arith.constant 1 : index
    %82 = memref.load %arg3[%c1_52] : memref<2xi32, #tpu.memory_space<smem>>
    %83 = arith.index_cast %82 : i32 to index
    %c0_53 = arith.constant 0 : index
    %84 = vector.load %arg15[%83, %c0_53] : memref<16x32xf32, #tpu.memory_space<vmem>>, vector<1x32xf32>
    %c1_54 = arith.constant 1 : index
    %c0_55 = arith.constant 0 : index
    %85 = vector.load %arg17[%c1_54, %c0_55] : memref<2x32xf32, #tpu.memory_space<vmem>>, vector<1x32xf32>
    tpu.vector_store %arg17[%c1_54, %c0_55], %84 {strides = array<i32>} : memref<2x32xf32, #tpu.memory_space<vmem>>, vector<1x32xf32>,
    %c0_56 = arith.constant 0 : index
    %c0_57 = arith.constant 0 : index
    %86 = vector.load %arg17[%c0_56, %c0_57] : memref<2x32xf32, #tpu.memory_space<vmem>>, vector<2x32xf32>
    %87 = vector.broadcast %75 : vector<1x32xf32> to vector<2x32xf32>
    %88 = arith.addf %86, %87 : vector<2x32xf32>
    %c0_58 = arith.constant 0 : index
    %c0_59 = arith.constant 0 : index
    %89 = vector.load %arg10[%c0_58, %c0_59] : memref<1x32xf32, #tpu.memory_space<vmem>>, vector<1x32xf32>
    %cst_60 = arith.constant dense<0.000000e+00> : vector<1x2xf32>
    %90 = tpu.matmul %89, %88, %cst_60 {dimension_numbers = #tpu.dot_dimension_numbers<[1], [1], [0], [0], [0, 0, 1, 0], [], []>} : vector<1x32xf32>, vector<2x32xf32>, vector<1x2xf32> -> vector<1x2xf32>
    %c0_61 = arith.constant 0 : index
    %91 = memref.load %arg11[%c0_61] : memref<1xf32, #tpu.memory_space<smem>>
    %92 = vector.broadcast %91 : f32 to vector<1x2xf32>
    %93 = arith.addf %90, %92 : vector<1x2xf32>
    %c0_62 = arith.constant 0 : index
    %c0_63 = arith.constant 0 : index
    %94 = vector.load %arg12[%c0_62, %c0_63] : memref<1x2xf32, #tpu.memory_space<vmem>>, vector<1x2xf32>
    tpu.vector_store %arg12[%c0_62, %c0_63], %93 {strides = array<i32>} : memref<1x2xf32, #tpu.memory_space<vmem>>, vector<1x2xf32>,
    %c0_64 = arith.constant 0 : index
    %c0_65 = arith.constant 0 : index
    %95 = vector.load %arg13[%c0_64, %c0_65] : memref<8x2xf32, #tpu.memory_space<vmem>>, vector<8x2xf32>
    tpu.vector_store %arg13[%c0_64, %c0_65], %66 {strides = array<i32>} : memref<8x2xf32, #tpu.memory_space<vmem>>, vector<8x2xf32>,
    return
  }
  func.func @transform_2(%arg0: i32, %arg1: memref<8xi32, #tpu.memory_space<smem>>, %arg2: memref<2xi32, #tpu.memory_space<smem>>, %arg3: memref<2xi32, #tpu.memory_space<smem>>) -> (i32, i32) {
    %c0_i32 = arith.constant 0 : i32
    %c0_i32_0 = arith.constant 0 : i32
    %c0_i32_1 = arith.constant 0 : i32
    return %c0_i32, %c0_i32_0 : i32, i32
  }
  func.func @transform_3(%arg0: i32, %arg1: memref<8xi32, #tpu.memory_space<smem>>, %arg2: memref<2xi32, #tpu.memory_space<smem>>, %arg3: memref<2xi32, #tpu.memory_space<smem>>) -> (i32, i32) {
    %c0_i32 = arith.constant 0 : i32
    %c0_i32_0 = arith.constant 0 : i32
    %c0_i32_1 = arith.constant 0 : i32
    return %c0_i32, %c0_i32_0 : i32, i32
  }
  func.func @transform_4(%arg0: i32, %arg1: memref<8xi32, #tpu.memory_space<smem>>, %arg2: memref<2xi32, #tpu.memory_space<smem>>, %arg3: memref<2xi32, #tpu.memory_space<smem>>) -> (i32, i32) {
    %c0_i32 = arith.constant 0 : i32
    %c0_i32_0 = arith.constant 0 : i32
    %c0_i32_1 = arith.constant 0 : i32
    return %c0_i32, %c0_i32_0 : i32, i32
  }
  func.func @transform_5(%arg0: i32, %arg1: memref<8xi32, #tpu.memory_space<smem>>, %arg2: memref<2xi32, #tpu.memory_space<smem>>, %arg3: memref<2xi32, #tpu.memory_space<smem>>) -> (i32, i32) {
    %c0_i32 = arith.constant 0 : i32
    %c0_i32_0 = arith.constant 0 : i32
    %c0_i32_1 = arith.constant 0 : i32
    return %c0_i32, %c0_i32_0 : i32, i32
  }
  func.func @transform_6(%arg0: i32, %arg1: memref<8xi32, #tpu.memory_space<smem>>, %arg2: memref<2xi32, #tpu.memory_space<smem>>, %arg3: memref<2xi32, #tpu.memory_space<smem>>) -> (i32, i32) {
    %c0_i32 = arith.constant 0 : i32
    %c0_i32_0 = arith.constant 0 : i32
    %c0_i32_1 = arith.constant 0 : i32
    return %c0_i32, %c0_i32_0 : i32, i32
  }
  func.func @transform_7(%arg0: i32, %arg1: memref<8xi32, #tpu.memory_space<smem>>, %arg2: memref<2xi32, #tpu.memory_space<smem>>, %arg3: memref<2xi32, #tpu.memory_space<smem>>) -> i32 {
    %c0_i32 = arith.constant 0 : i32
    %c0_i32_0 = arith.constant 0 : i32
    return %c0_i32 : i32
  }
  func.func @transform_8(%arg0: i32, %arg1: memref<8xi32, #tpu.memory_space<smem>>, %arg2: memref<2xi32, #tpu.memory_space<smem>>, %arg3: memref<2xi32, #tpu.memory_space<smem>>) -> (i32, i32) {
    %c0_i32 = arith.constant 0 : i32
    %c0_i32_0 = arith.constant 0 : i32
    %c0_i32_1 = arith.constant 0 : i32
    return %c0_i32, %c0_i32_0 : i32, i32
  }
  func.func @transform_9(%arg0: i32, %arg1: memref<8xi32, #tpu.memory_space<smem>>, %arg2: memref<2xi32, #tpu.memory_space<smem>>, %arg3: memref<2xi32, #tpu.memory_space<smem>>) -> (i32, i32) {
    %c0_i32 = arith.constant 0 : i32
    %c0_i32_0 = arith.constant 0 : i32
    %c0_i32_1 = arith.constant 0 : i32
    return %c0_i32, %c0_i32_0 : i32, i32
  }
}

</mosaic_0001>

<bundles_post_ra>
// kernel: tpu_custom_call.1
= control target key start
LH: loop header
LB: loop body
LE: loop exit
PB: predicated region body
PF: predicated region fallthrough
CT: control target
= control target key end

     0   :  { %s623_s27 = smov [#allocation8]   ;;  %s624_s28 = smov [#allocation9]   ;;  %s766_s0 = inlined_call_operand.vmem [shape: s32[8], index: 0, kind: input, shape index: {}]   ;;  %s767_s3 = inlined_call_operand.hbm [shape: f32[32,32], index: 3, kind: input, shape index: {}]   ;;  %s768_s4 = inlined_call_operand.hbm [shape: f32[16,32], index: 4, kind: input, shape index: {}]   ;;  %s769_s5 = inlined_call_operand.hbm [shape: bf16[32,96], index: 5, kind: input, shape index: {}]   ;;  %s770_s6 = inlined_call_operand.vmem [shape: f32[1,96], index: 6, kind: input, shape index: {}]   ;;  %s771_s7 = inlined_call_operand.hbm [shape: bf16[32,32], index: 7, kind: input, shape index: {}]   ;;  %s772_s8 = inlined_call_operand.vmem [shape: f32[1,32], index: 8, kind: input, shape index: {}]   ;;  %s773_s9 = inlined_call_operand.vmem [shape: f32[1,32], index: 9, kind: input, shape index: {}]   ;;  %s774_s10 = inlined_call_operand.<no memory space> [shape: f32[1], index: 10, kind: input, shape index: {}]   ;;  %s775_s11 = inlined_call_operand.hbm [shape: f32[1,2], index: 11, kind: output, shape index: {0}]   ;;  %s776_s12 = inlined_call_operand.vmem [shape: f32[8,2], index: 12, kind: output, shape index: {1}]   ;;  %s777_s1 = inlined_call_operand.vmem [shape: s32[2], index: 1, kind: input, shape index: {}]   ;;  %s778_s2 = inlined_call_operand.vmem [shape: s32[2], index: 2, kind: input, shape index: {}]  }
   0x1   :  { %s19_s23 = sshll.u32 %s766_s0, 4  ;;  %s24_s26 = sshll.u32 %s777_s1, 4  ;;  %s20_s23 = int_to_ptr.vmem [resolvable:$true] %s19_s23  ;;  %s25_s26 = int_to_ptr.vmem [resolvable:$true] %s24_s26 }
   0x2   :  { %22 = dma.vmem_to_smem %s20_s23, 16, %s623_s27, [#allocation7] }
   0x3   :  { %27 = dma.vmem_to_smem %s25_s26, 16, %s624_s28, [#allocation7] }
   0x4   :  { %s29_s13 = sshll.u32 %s778_s2, 4  ;;  %s625_s14 = smov [#allocation10]   ;;  %s30_s13 = int_to_ptr.vmem [resolvable:$true] %s29_s13 }
   0x5   :  { %32 = dma.vmem_to_smem %s30_s13, 16, %s625_s14, [#allocation7] }
   0x6   :  { %611 = dma.done.wait [#allocation7], 48 }
   0x7   :  { %612 = vsyncadd [#allocation7], 4294967248 }
   0x8   :  { %36 = sfence }
   0x9   :  { %37 = vsyncpa [#allocation13], 0 }
   0xa   :  { %38 = vsyncpa [#allocation16], 0 }
   0xb   :  { %39 = vsyncpa [#allocation14], 0  ;;  %s44_s15 = sshll.u32 %s769_s5, 4  ;;  %s626_s16 = smov [#allocation12]   ;;  %s45_s15 = int_to_ptr.hbm [resolvable:$true] %s44_s15 }
   0xc   :  { %s46_s17 = sshll.u32 %s626_s16, 4  ;;  %s59_s2 = sshll.u32 %s771_s7, 4  ;;  %s47_s17 = int_to_ptr.vmem [resolvable:$true] %s46_s17  ;;  %s60_s2 = int_to_ptr.hbm [resolvable:$true] %s59_s2 }
   0xd   :  { %s627_s20 = smov 64   ;;  %s628_s21 = smov 4  }
   0xe   :  { %52 = dma.hbm_to_vmem [thread:$0]  %s45_s15, 256, %s47_s17, [#allocation13], %s627_s20, %s627_s20, %s628_s21  }
   0xf   :  { %s629_s22 = smov [#allocation15]  }
  0x10   :  { %s61_s23 = sshll.u32 %s629_s22, 4  ;;  %s62_s23 = int_to_ptr.vmem [resolvable:$true] %s61_s23 }
  0x11   :  { %67 = dma.hbm_to_vmem [thread:$0]  %s60_s2, 256, %s62_s23, [#allocation16], %s627_s20, %s627_s20, %s628_s21  }
  0x12   :  { %613 = dma.done.wait [#allocation13], 256  }
  0x13   :  { %614 = vsyncadd [#allocation13], 4294967040 }
  0x14   :  { %615 = dma.done.wait [#allocation16], 256  }
  0x15   :  { %616 = vsyncadd [#allocation16], 4294967040  ;;  %s90_s7 = sshll.u32 %s767_s3, 4  ;;  %s630_s25 = smov [#allocation2]   ;;  %s91_s7 = int_to_ptr.hbm [resolvable:$true] %s90_s7 }
  0x16   :  { %s92_s26 = sshll.u32 %s630_s25, 4  ;;  %s104_s29 = sshll.u32 %s768_s4, 4  ;;  %s93_s26 = int_to_ptr.vmem [resolvable:$true] %s92_s26  ;;  %s105_s29 = int_to_ptr.hbm [resolvable:$true] %s104_s29 }
  0x17   :  { %95 = dma.hbm_to_vmem [thread:$0]  %s91_s7, 512, %s93_s26, [#allocation6] }
  0x18   :  { %s631_s30 = smov [#allocation3]  }
  0x19   :  { %s106_s13 = sshll.u32 %s631_s30, 4  ;;  %s107_s13 = int_to_ptr.vmem [resolvable:$true] %s106_s13 }
  0x1a   :  { %109 = dma.hbm_to_vmem [thread:$0]  %s105_s29, 256, %s107_s13, [#allocation6 + $0x1] }
  0x1b   :  { %617 = dma.done.wait [#allocation6], 512 }
  0x1c   :  { %618 = vsyncadd [#allocation6], 4294966784  ;;  %s113_s14 = sld [smem:[#allocation8]]  ;;  %vm116_vm0 = vcmask 253952   ;;  %v435_v0 = vld [vmem:[#allocation12 + $0x8] sm:$0xff]  ;;  %v434_v2 = vld [vmem:[#allocation12] sm:$0xff] }
  0x1d   :  { %s399_s0 = sld [smem:[#allocation8 + $0x1]]  ;;  %187 = vmatpush.bf16.msra.mxu0 %v435_v0  ;;  %vm177_vm1 = vcmask 261120   ;;  %v449_v15 = vld [vmem:[%s770_s6] ss:$0 sm:$0xff]  ;;  %s632_s30 = smov 96   ;;  %vm223_vm2 = vcmask 15360  }
  0x1e   :  { %s400_s1 = sld [smem:[#allocation8 + $0x2]]  ;;  %v437_v28 = vld [vmem:[#allocation15 + $0x8] sm:$0xff]  ;;  %vm240_vm3 = vcmask 1041408   ;;  %v436_v33 = vld [vmem:[#allocation15] sm:$0xff] }
  0x1f   :  { %s401_s3 = sld [smem:[#allocation8 + $0x3]]  ;;  %293 = vmatpush.bf16.msra.mxu3 %v437_v28  ;;  %v450_v36 = vld [vmem:[%s772_s8] ss:$0 sm:$0xff] }
  0x20   :  { %s402_s15 = sld [smem:[#allocation8 + $0x4]] }
  0x21   :  { %s403_s16 = sld [smem:[#allocation8 + $0x5]]  ;;  %188 = vmatpush.bf16.msra.mxu0 %v434_v2 }
  0x22   :  { %s404_s17 = sld [smem:[#allocation8 + $0x6]]  ;;  %s114_s18 = scalar_lea.vmem [#allocation2], %s113_s14 }
  0x23   :  { %v115_v1 = vld [vmem:[%s114_s18] sm:$0x1]  ;;  %s405_s4 = sld [smem:[#allocation8 + $0x7]]  ;;  %s119_s19 = scalar_lea.vmem [#allocation2], %s399_s0  ;;  %294 = vmatpush.bf16.msra.mxu3 %v436_v33 }
  0x24   :  { %117 = vst.msk [vmem:[#allocation4] sm:$0x1] %vm116_vm0, %v115_v1  ;;  %v120_v3 = vld [vmem:[%s119_s19] sm:$0x1]  ;;  %s123_s2 = scalar_lea.vmem [#allocation2], %s400_s1  ;;  %s146_s7 = sld [smem:[#allocation9]] }
  0x25   :  { %121 = vst.msk [vmem:[#allocation4 + $0x1] sm:$0x1] %vm116_vm0, %v120_v3  ;;  %v124_v4 = vld [vmem:[%s123_s2] sm:$0x1]  ;;  %s127_s21 = scalar_lea.vmem [#allocation2], %s401_s3  ;;  %s406_s25 = sld [smem:[#allocation9 + $0x1]] }
  0x26   :  { %125 = vst.msk [vmem:[#allocation4 + $0x2] sm:$0x1] %vm116_vm0, %v124_v4  ;;  %v128_v5 = vld [vmem:[%s127_s21] sm:$0x1]  ;;  %s131_s22 = scalar_lea.vmem [#allocation2], %s402_s15 }
  0x27   :  { %129 = vst.msk [vmem:[#allocation4 + $0x3] sm:$0x1] %vm116_vm0, %v128_v5  ;;  %v132_v6 = vld [vmem:[%s131_s22] sm:$0x1]  ;;  %s135_s23 = scalar_lea.vmem [#allocation2], %s403_s16 }
  0x28   :  { %133 = vst.msk [vmem:[#allocation4 + $0x4] sm:$0x1] %vm116_vm0, %v132_v6  ;;  %v136_v7 = vld [vmem:[%s135_s23] sm:$0x1]  ;;  %s139_s5 = scalar_lea.vmem [#allocation2], %s404_s17 }
  0x29   :  { %137 = vst.msk [vmem:[#allocation4 + $0x5] sm:$0x1] %vm116_vm0, %v136_v7  ;;  %v140_v8 = vld [vmem:[%s139_s5] sm:$0x1]  ;;  %s143_s24 = scalar_lea.vmem [#allocation2], %s405_s4 }
  0x2a   :  { %141 = vst.msk [vmem:[#allocation4 + $0x6] sm:$0x1] %vm116_vm0, %v140_v8  ;;  %v144_v9 = vld [vmem:[%s143_s24] sm:$0x1]  ;;  %s147_s26 = scalar_lea.vmem [#allocation2], %s146_s7 }
  0x2b   :  { %145 = vst.msk [vmem:[#allocation4 + $0x7] sm:$0x1] %vm116_vm0, %v144_v9  ;;  %v148_v10 = vld [vmem:[%s147_s26] sm:$0x1]  ;;  %s151_s27 = scalar_lea.vmem [#allocation2], %s406_s25 }
  0x2c   :  { %149 = vst.msk [vmem:[#allocation4 + $0x8] sm:$0x1] %vm116_vm0, %v148_v10  ;;  %v152_v11 = vld [vmem:[%s151_s27] sm:$0x1] }
  0x2d   :  { %153 = vst.msk [vmem:[#allocation4 + $0x9] sm:$0x1] %vm116_vm0, %v152_v11 }
  0x32   :  { %v154_v12 = vld [vmem:[#allocation4] sm:$0xff] }
  0x34   :  { %v155_v13 = vld [vmem:[#allocation4 + $0x8] sm:$0x3] }
  0x35   :  { %v156_v14 = vpack.c.bf16 %v155_v13, %v154_v12 }
  0x37   :  { %415 = vmatmul.msk.bf16.vlgmr.msra.gmra.mxu0 %vm177_vm1, %v156_v14 }
  0xb4   :  { %v190_v16 = vpop.f32.mrf.mxu0 }
  0xb5   :  { %v191_v17 = vadd.f32 %v449_v15, %v190_v16 }
  0xbc   :  { %v192_v18 = vpop.f32.mrf.mxu0 }
  0xbd   :  { %v193_v19 = vadd.f32 %v449_v15, %v192_v18 }
  0xbf   :  { %196 = vrot.lane.b32.xlu0 %v193_v19, %s632_s30 }
 0x131   :  { %v197_v20 = vpop.permute.xlu0 %196 }
 0x132   :  { %416 = vmatpush.xpose.msk.msra.mxu1 %vm177_vm1, %v197_v20 }
 0x135   :  { %417 = vmatmul.msk.f32.vlgmr.msra.gmra.mxu1 %vm177_vm1, %v191_v17 }
 0x1b2   :  { %v220_v21 = vpop.f32.mrf.mxu1 }
 0x1b3   :  { %v224_v22 = vsel %vm223_vm2, %v220_v21, -inf }
 0x1b4   :  { %225 = vmax.xlane.f32.xlu0 %v224_v22 }
 0x227   :  { %v226_v23 = vpop.xlane.xlu0 %225 }
 0x228   :  { %v227_v24 = vsub.f32 %v220_v21, %v226_v23 }
 0x22a   :  { %v228_v25 = vmul.f32 1.442695, %v227_v24 }
 0x22c   :  { %451 = vpow2.f32 %v228_v25 }
 0x232   :  { %v452_v26 = vpop.eup %451 }
 0x233   :  { %v230_v27 = vsel %vm223_vm2, %v452_v26, 0.0 }
 0x234   :  { %231 = vadd.xlane.f32.xlu1 %v230_v27 }
 0x24d   :  { %235 = vrot.lane.b32.xlu1 %v193_v19, %s627_s20 }
 0x2a7   :  { %v232_v29 = vpop.xlane.xlu1 %231 }
 0x2a8   :  { %453 = vrcp.f32 %v232_v29 }
 0x2ae   :  { %v454_v30 = vpop.eup %453 }
 0x2af   :  { %v234_v32 = vmul.f32 %v454_v30, %v452_v26 }
 0x2bf   :  { %v236_v31 = vpop.permute.xlu1 %235 }
 0x2c0   :  { %418 = vmatpush.msk.msra.mxu2 %vm240_vm3, %v236_v31 }
 0x2c1   :  { %419 = vmatmul.msk.f32.vlgmr.msra.gmra.mxu2 %vm223_vm2, %v234_v32 }
 0x344   :  { %v260_v34 = vpop.f32.mrf.mxu2 }
 0x345   :  { %v263_v35 = vpack.c.bf16 %v260_v34, %v260_v34 }
 0x347   :  { %428 = vmatmul.msk.bf16.vlgmr.msra.gmra.mxu3 %vm177_vm1, %v263_v35 }
 0x3ca   :  { %v296_v37 = vpop.f32.mrf.mxu3 }
 0x3cb   :  { %v297_v38 = vadd.f32 %v450_v36, %v296_v37 }
 0x3cd   :  { %v300_v39 = vsel %vm177_vm1, %v297_v38, 0.0 }
 0x3ce   :  { %v301_v40 = vrot.slane %v300_v39, 4 }
 0x3d0   :  { %v302_v41 = vadd.f32 %v301_v40, %v300_v39 }
 0x3d2   :  { %v303_v42 = vrot.slane %v302_v41, 2  ;;  %v298_v43 = vpop.f32.mrf.mxu3 }
 0x3d4   :  { %v304_v44 = vadd.f32 %v303_v42, %v302_v41 }
 0x3d6   :  { %v305_v45 = vrot.slane %v304_v44, 1 }
 0x3d8   :  { %v306_v46 = vadd.f32 %v305_v45, %v304_v44 }
 0x3d9   :  { %619 = dma.done.wait [#allocation6 + $0x1], 256 }
 0x3da   :  { %620 = vsyncadd [#allocation6 + $0x1], 4294967040  ;;  %s310_s20 = sld [smem:[#allocation10]]  ;;  %351 = vst.msk [vmem:[%s776_s12] sm:$0xff] %vm223_vm2, %v234_v32  ;;  %v320_v51 = vld [vmem:[%s773_s9] sm:$0x1]  ;;  %v322_v52 = vstv %s774_s10 }
 0x3db   :  { %s429_s8 = sld [smem:[#allocation10 + $0x1]]  ;;  %s633_s18 = smov [#allocation17]   ;;  %vm349_vm4 = vcmask 8192  }
 0x3dc   :  { %s357_s4 = sshll.u32 %s633_s18, 4  ;;  %s359_s21 = sshll.u32 %s775_s11, 4  ;;  %s358_s4 = int_to_ptr.vmem [resolvable:$true] %s357_s4  ;;  %s360_s21 = int_to_ptr.hbm [resolvable:$true] %s359_s21 }
 0x3e0   :  { %s311_s1 = scalar_lea.vmem [#allocation3], %s310_s20 }
 0x3e1   :  { %v312_v47 = vld [vmem:[%s311_s1] sm:$0x1]  ;;  %s315_s3 = scalar_lea.vmem [#allocation3], %s429_s8 }
 0x3e2   :  { %313 = vst.msk [vmem:[#allocation5] sm:$0x1] %vm116_vm0, %v312_v47  ;;  %v316_v48 = vld [vmem:[%s315_s3] sm:$0x1] }
 0x3e3   :  { %317 = vst.msk [vmem:[#allocation5 + $0x1] sm:$0x1] %vm116_vm0, %v316_v48 }
 0x3ea   :  { %v318_v49 = vld [vmem:[#allocation5] sm:$0x3] }
 0x3eb   :  { %v319_v50 = vadd.f32 %v318_v49, %v306_v46 }
 0x3ed   :  { %430 = vmatpush.xpose.msk.msrb.mxu2 %vm177_vm1, %v319_v50 }
 0x3f0   :  { %431 = vmatmul.msk.f32.vlgmr.msrb.gmra.mxu2 %vm177_vm1, %v320_v51 }
 0x473   :  { %v346_v53 = vpop.f32.mrf.mxu2 }
 0x474   :  { %v347_v54 = vadd.f32 %v346_v53, %v322_v52 }
 0x476   :  { %350 = vst.msk [vmem:[#allocation17] sm:$0x1] %vm349_vm4, %v347_v54 }
 0x477   :  { %362 = dma.vmem_to_hbm [thread:$0]  %s358_s4, 16, %s360_s21, [#allocation14]  }
 0x478   :  { %621 = dma.done.wait [#allocation14], 16  }
 0x479   :  { %622 = vsyncadd [#allocation14], 4294967280 }
 0x47a   :  { %371 = vsyncpa [#allocation13], 1 }
 0x47b   :  { %372 = vsyncpa [#allocation16], 1 }
 0x47c   :  { %373 = vsyncpa [#allocation14], 1 }
 0x47d   :  { %374 = vsyncmov [#allocation6] }
 0x480   :  { %s375_s9 = vpop.sfrf %374 }
 0x481   :  { %p432_p0 = scmp.ne.s32.totalorder %s375_s9, 0 }
 0x483   :  { %379 = shalt.err (%p432_p0)  }
 0x484   :  { %381 = vsyncmov [#allocation6 + $0x1] }
 0x487   :  { %s382_s10 = vpop.sfrf %381 }
 0x488   :  { %p433_p1 = scmp.ne.s32.totalorder %s382_s10, 0 }
 0x48a   :  { %386 = shalt.err (%p433_p1)  }

</bundles_post_ra>
